<compile_context>
chip_gen: v6e
topology: v6e:2x2x1
jax: 0.10.0
libtpu: 0.0.40
codegen_flags: <defaults>
</compile_context>

<pallas_src>
import functools

import jax
import jax.numpy as jnp
from jax import lax
from jax.experimental import pallas as pl
from jax.experimental.pallas import tpu as pltpu


# ---------------------------------------------------------------------------
# Host-side weight repacking: fold the nearest-2x upsample into the conv.
# ---------------------------------------------------------------------------
def _phase_weights(weight_oihw):
    """Phase-decomposed 2x2 conv weights, shape (2, 2, 2, 2, Cin, Cout).

    Output row y = 2*i + ph of conv-on-upsampled-image reads original rows
    {i-1, i} (ph=0) or {i, i+1} (ph=1), with the 3 kernel rows collapsing onto
    those 2 taps; same along columns.  Zero padding is handled by the 1-pixel
    pad of the ORIGINAL image.  Axes: (ph, pw, r, s, cin, cout).
    """
    c_out, c_in, kh, kw = weight_oihw.shape
    assert (kh, kw) == (3, 3) and c_out == c_in
    w_hwio = jnp.transpose(weight_oihw, (2, 3, 1, 0)).astype(jnp.float32)
    a = jnp.array([[[1., 0., 0.],
                    [0., 1., 1.]],
                   [[1., 1., 0.],
                    [0., 0., 1.]]], dtype=jnp.float32)           # (phase, tap, k)
    return jnp.einsum('prh,qsw,hwio->pqrsio', a, a, w_hwio)      # (2,2,2,2,Ci,Co)


def _pack_split(wp):
    """(16, Cin, Cout) with flat index ((ph*2 + pw)*2 + r)*2 + s."""
    ci, co = wp.shape[4], wp.shape[5]
    return wp.reshape(16, ci, co)


def _pack_wide(wp):
    """(2, 6*Cin, 2*Cout): per phase, K blocks ordered (r, c) with c the
    column shift in {0,1,2}; output halves are pw=0 | pw=1.  The shared
    middle column (c=1) feeds both halves; c=0 / c=2 feed only one."""
    ci, co = wp.shape[4], wp.shape[5]
    w = jnp.zeros((2, 6 * ci, 2 * co), jnp.float32)
    for ph in range(2):
        for r in range(2):
            for c in range(3):
                k0 = (r * 3 + c) * ci
                for pw in range(2):
                    s = c - pw
                    if 0 <= s <= 1:
                        w = w.at[ph, k0:k0 + ci,
                                 pw * co:(pw + 1) * co].set(wp[ph, pw, r, s])
    return w


# ---------------------------------------------------------------------------
# Kernel
# ---------------------------------------------------------------------------
def _fused_upsample_conv_kernel(x_ref, w_ref, b_ref, o_ref, *, th, wd, ch, widen):
    """One (batch, row-tile) grid step.

    x_ref: (1, H+2, W+2, C)   zero-padded ORIGINAL-resolution NHWC image
                              (index_map constant in the tile axis -> resident)
    w_ref: (2, 6C, 2C) if widen else (16, C, C)   pre-packed conv weights
    b_ref: (1, 2C)            bias duplicated for both pw halves (f32)
    o_ref: (1, th, 2, W, 2C)  out[0,i,ph,j,pw*C+c] == y[2*(t*th+i)+ph, 2j+pw, c]
    """
    t = pl.program_id(1)
    row0 = pl.multiple_of(t * th, th)

    # Three column-shifted, flattened halo buffers (9 -> 3 materializations).
    # W % 8 == 0, so the ((th+2), W, C) -> ((th+2)*W, C) flatten is a
    # sublane merge and the per-phase row shifts below are sublane-aligned.
    col = [x_ref[0, pl.ds(row0, th + 2), c0:c0 + wd, :].reshape((th + 2) * wd, ch)
           for c0 in range(3)]

    for ph in range(2):
        if widen:
            # Single widened MXU dot per phase: (M, 6C) x (6C, 2C) -> (M, 2C).
            lhs = jnp.concatenate(
                [col[c0][(ph + r) * wd:(ph + r + th) * wd, :]
                 for r in range(2) for c0 in range(3)], axis=-1)
            y = jnp.dot(lhs, w_ref[ph, :, :],
                        preferred_element_type=jnp.float32)
        else:
            # C large enough to fill the MXU: 4 separate (M,C)x(C,C) dots per
            # output half, accumulation starts from the first dot (no bias init).
            halves = []
            for pw in range(2):
                acc = None
                for r in range(2):
                    for s in range(2):
                        wi = ((ph * 2 + pw) * 2 + r) * 2 + s     # static
                        patch = col[pw + s][(ph + r) * wd:(ph + r + th) * wd, :]
                        d = jnp.dot(patch, w_ref[wi, :, :],
                                    preferred_element_type=jnp.float32)
                        acc = d if acc is None else acc + d
                halves.append(acc)
            y = jnp.concatenate(halves, axis=-1)                 # (M, 2C)
        # Single (1, 2C) bias broadcast on the final tile, then lane-dense store.
        y = y + b_ref[...]
        o_ref[0, :, ph, :, :] = y.reshape(th, wd, 2 * ch).astype(o_ref.dtype)


# ---------------------------------------------------------------------------
# Wrapper
# ---------------------------------------------------------------------------
def _pick_row_tile(h, cap=16):
    """Largest divisor of H that is <= cap.  `cap` is generation-dependent:
    raise on v5e/v6e (128 MiB VMEM), keep small on v7x (64 MiB)."""
    for cand in range(min(h, cap), 0, -1):
        if h % cand == 0:
            return cand
    return 1


def _vmem_limit_bytes(h, w, c, th, widen, compute_dtype, out_dtype):
    """Explicit scoped-VMEM budget: blocks + single-copy constants + temps."""
    csz = jnp.dtype(compute_dtype).itemsize
    osz = jnp.dtype(out_dtype).itemsize
    in_blk = 2 * (h + 2) * (w + 2) * c * csz            # double-buffered image
    w_bytes = (24 * c * c if widen else 16 * c * c) * csz   # single VMEM copy
    b_bytes = 2 * c * 4
    out_blk = 2 * th * 2 * w * 2 * c * osz               # double-buffered out tile
    temps = (3 * (th + 2) * w * c * csz                  # 3 column halo buffers
             + (th * w * 6 * c * csz if widen else 2 * th * w * c * 4)
             + th * w * 2 * c * 4)                       # f32 result tile
    need = in_blk + w_bytes + b_bytes + out_blk + temps
    limit = int(need * 1.5) + (4 << 20)                  # headroom
    cap = 100 << 20                                      # v5e/v6e budget
    try:                                                 # v7x: 64 MiB physical
        cap = min(cap, int(pltpu.get_tpu_info().vmem_capacity_bytes) * 3 // 4)
    except Exception:
        pass
    return max(32 << 20, min(limit, cap))


def upsample_forward_nhwc(x, weight_oihw, bias, *, row_tile=None, widen=None,
                          compute_dtype=jnp.bfloat16, out_dtype=None,
                          vmem_limit_bytes=None):
    """nearest_2x + Conv2d(3x3, s=1, p=1); NHWC in -> NHWC out (hot path)."""
    b_, h, w, c = x.shape
    assert weight_oihw.shape == (c, c, 3, 3), weight_oihw.shape
    assert bias.shape == (c,), bias.shape
    # Layout contract: W % 8 keeps in-kernel flattens as sublane merges.
    # Lane efficiency additionally wants (2*C) % 128 == 0 at production sizes.
    assert w % 8 == 0, f"W={w} must be a multiple of 8"

    if out_dtype is None:
        out_dtype = compute_dtype
    if widen is None:
        widen = c <= 128   # 256-wide MXU (v6e/v7x) underfilled below this

    th = row_tile if row_tile is not None else _pick_row_tile(h)
    assert 1 <= th <= h and h % th == 0, (h, th)
    nt = h // th

    # Pad only the SMALL (pre-upsample) input; the 4x-sized upsampled tensor
    # is never materialized.
    xpad = jnp.pad(x.astype(compute_dtype), ((0, 0), (1, 1), (1, 1), (0, 0)))

    wp = _phase_weights(weight_oihw)
    wk = (_pack_wide(wp) if widen else _pack_split(wp)).astype(compute_dtype)
    b2 = jnp.concatenate([bias, bias]).reshape(1, 2 * c).astype(jnp.float32)

    if vmem_limit_bytes is None:
        vmem_limit_bytes = _vmem_limit_bytes(h, w, c, th, widen,
                                             compute_dtype, out_dtype)

    kernel = functools.partial(_fused_upsample_conv_kernel,
                               th=th, wd=w, ch=c, widen=widen)

    out5 = pl.pallas_call(
        kernel,
        out_shape=jax.ShapeDtypeStruct((b_, h, 2, w, 2 * c), out_dtype),
        grid_spec=pltpu.PrefetchScalarGridSpec(
            num_scalar_prefetch=0,
            grid=(b_, nt),
            in_specs=[
                # Whole padded image per batch element; constant in the tile
                # axis -> DMA'd once per b and kept resident while row tiles
                # of the (4x larger) output stream out.
                pl.BlockSpec((1, h + 2, w + 2, c), lambda b, t: (b, 0, 0, 0)),
                # Weights / bias: whole-array VMEM residents (single copy,
                # no dead double-buffer).
                pl.BlockSpec(memory_space=pltpu.MemorySpace.VMEM),
                pl.BlockSpec(memory_space=pltpu.MemorySpace.VMEM),
            ],
            out_specs=pl.BlockSpec((1, th, 2, w, 2 * c),
                                   lambda b, t: (b, t, 0, 0, 0)),
        ),
        compiler_params=pltpu.CompilerParams(
            dimension_semantics=("parallel", "parallel"),
            vmem_limit_bytes=int(vmem_limit_bytes)),
    )(xpad, wk, b2)

    # (B, H, 2, W, 2C) is byte-identical to NHWC (B, 2H, 2W, C): free bitcast.
    return out5.reshape(b_, 2 * h, 2 * w, c)


def upsample_forward(x_nchw, weight_oihw, bias, **kwargs):
    """NCHW adapter matching the PyTorch module's layout contract.  The
    transposes are pure layout plumbing around the NHWC hot path."""
    x = jnp.transpose(x_nchw, (0, 2, 3, 1))
    out = upsample_forward_nhwc(x, weight_oihw, bias, **kwargs)
    return jnp.transpose(out, (0, 3, 1, 2))


def _reference(x_nchw, weight_oihw, bias):
    """Pure-JAX reference (XLA conv) for correctness checking."""
    x = jnp.repeat(jnp.repeat(x_nchw, 2, axis=2), 2, axis=3)
    out = lax.conv_general_dilated(
        x, weight_oihw, window_strides=(1, 1), padding=((1, 1), (1, 1)),
        dimension_numbers=("NCHW", "OIHW", "NCHW"),
        precision=lax.Precision.HIGHEST)
    return out + bias.reshape(1, -1, 1, 1)


if __name__ == "__main__":
    B, C, H, W = 2, 4, 16, 16

    key = jax.random.PRNGKey(0)
    kx, kw_, kb = jax.random.split(key, 3)

    x = jax.random.normal(kx, (B, C, H, W), dtype=jnp.float32)

    # Deterministic Conv2d(in=C, out=C, k=3) params (PyTorch-style bound).
    fan_in = C * 3 * 3
    bound = 1.0 / (fan_in ** 0.5)
    weight = jax.random.uniform(kw_, (C, C, 3, 3), jnp.float32, -bound, bound)
    bias = jax.random.uniform(kb, (C,), jnp.float32, -bound, bound)

    ref = jax.block_until_ready(_reference(x, weight, bias))

    # f32, widened (M,6C)x(6C,2C) MXU path -- exact check, exercises row tiling.
    out_wide = jax.block_until_ready(
        upsample_forward(x, weight, bias, row_tile=8, widen=True,
                         compute_dtype=jnp.float32, out_dtype=jnp.float32))
    assert out_wide.shape == (B, C, 2 * H, 2 * W), out_wide.shape
    assert jnp.allclose(out_wide, ref, atol=1e-4, rtol=1e-4), float(
        jnp.max(jnp.abs(out_wide - ref)))

    # f32, split per-tap dot path (used for C >= 256) -- exact check.
    out_split = jax.block_until_ready(
        upsample_forward(x, weight, bias, row_tile=8, widen=False,
                         compute_dtype=jnp.float32, out_dtype=jnp.float32))
    assert jnp.allclose(out_split, ref, atol=1e-4, rtol=1e-4), float(
        jnp.max(jnp.abs(out_split - ref)))

    # Production defaults: bf16 MXU inputs, f32 accumulation, bf16 output.
    out_bf16 = jax.block_until_ready(upsample_forward(x, weight, bias))
    assert out_bf16.shape == (B, C, 2 * H, 2 * W), out_bf16.shape
    assert out_bf16.dtype == jnp.bfloat16, out_bf16.dtype
    assert jnp.allclose(out_bf16.astype(jnp.float32), ref,
                        atol=6e-2, rtol=6e-2), float(
        jnp.max(jnp.abs(out_bf16.astype(jnp.float32) - ref)))

    print("KERNEL_OK")
</pallas_src>

<mosaic_0001>
module attributes {stable_mosaic.version = 11 : i64} {
  func.func @_fused_upsample_conv_kernel(%arg0: i32, %arg1: i32, %arg2: memref<1x18x18x4xf32, #tpu.memory_space<vmem>>, %arg3: memref<2x24x8xf32, #tpu.memory_space<vmem>>, %arg4: memref<1x8xf32, #tpu.memory_space<vmem>>, %arg5: memref<1x8x2x16x8xf32, #tpu.memory_space<vmem>>) attributes {dimension_semantics = [#tpu.dimension_semantics<parallel>, #tpu.dimension_semantics<parallel>], iteration_bounds = array<i64: 2, 2>, scalar_prefetch = 0 : i64, scratch_operands = 0 : i64, tpu.core_type = #tpu.core_type<tc>, window_params = [{transform_indices = @transform_0, window_bounds = array<i64: 1, 18, 18, 4>}, {pipeline_mode = #tpu.pipeline_mode<synchronous>, transform_indices = @transform_1, window_bounds = array<i64: 2, 24, 8>}, {pipeline_mode = #tpu.pipeline_mode<synchronous>, transform_indices = @transform_2, window_bounds = array<i64: 1, 8>}, {transform_indices = @transform_3, window_bounds = array<i64: 1, 8, 2, 16, 8>}]} {
    %c8_i32 = arith.constant 8 : i32
    %0 = arith.muli %arg1, %c8_i32 : i32
    %1 = tpu.assume_multiple %0, 8 : i32
    %c0 = arith.constant 0 : index
    %2 = arith.index_cast %1 : i32 to index
    %c0_0 = arith.constant 0 : index
    %c0_1 = arith.constant 0 : index
    %3 = vector.load %arg2[%c0, %2, %c0_0, %c0_1] : memref<1x18x18x4xf32, #tpu.memory_space<vmem>>, vector<1x10x16x4xf32>
    %4 = vector.shape_cast %3 : vector<1x10x16x4xf32> to vector<10x16x4xf32>
    %5 = vector.shape_cast %4 : vector<10x16x4xf32> to vector<160x4xf32>
    %c0_2 = arith.constant 0 : index
    %6 = arith.index_cast %1 : i32 to index
    %c1 = arith.constant 1 : index
    %c0_3 = arith.constant 0 : index
    %7 = vector.load %arg2[%c0_2, %6, %c1, %c0_3] : memref<1x18x18x4xf32, #tpu.memory_space<vmem>>, vector<1x10x16x4xf32>
    %8 = vector.shape_cast %7 : vector<1x10x16x4xf32> to vector<10x16x4xf32>
    %9 = vector.shape_cast %8 : vector<10x16x4xf32> to vector<160x4xf32>
    %c0_4 = arith.constant 0 : index
    %10 = arith.index_cast %1 : i32 to index
    %c2 = arith.constant 2 : index
    %c0_5 = arith.constant 0 : index
    %11 = vector.load %arg2[%c0_4, %10, %c2, %c0_5] : memref<1x18x18x4xf32, #tpu.memory_space<vmem>>, vector<1x10x16x4xf32>
    %12 = vector.shape_cast %11 : vector<1x10x16x4xf32> to vector<10x16x4xf32>
    %13 = vector.shape_cast %12 : vector<10x16x4xf32> to vector<160x4xf32>
    %14 = vector.extract_strided_slice %5 {offsets = [0, 0], sizes = [128, 4], strides = [1, 1]} : vector<160x4xf32> to vector<128x4xf32>
    %15 = vector.extract_strided_slice %9 {offsets = [0, 0], sizes = [128, 4], strides = [1, 1]} : vector<160x4xf32> to vector<128x4xf32>
    %16 = vector.extract_strided_slice %13 {offsets = [0, 0], sizes = [128, 4], strides = [1, 1]} : vector<160x4xf32> to vector<128x4xf32>
    %17 = vector.extract_strided_slice %5 {offsets = [16, 0], sizes = [128, 4], strides = [1, 1]} : vector<160x4xf32> to vector<128x4xf32>
    %18 = vector.extract_strided_slice %9 {offsets = [16, 0], sizes = [128, 4], strides = [1, 1]} : vector<160x4xf32> to vector<128x4xf32>
    %19 = vector.extract_strided_slice %13 {offsets = [16, 0], sizes = [128, 4], strides = [1, 1]} : vector<160x4xf32> to vector<128x4xf32>
    %20 = tpu.concatenate %14, %15, %16, %17, %18, %19 in 1 : vector<128x4xf32>, vector<128x4xf32>, vector<128x4xf32>, vector<128x4xf32>, vector<128x4xf32>, vector<128x4xf32> -> vector<128x24xf32>
    %c0_6 = arith.constant 0 : index
    %c0_7 = arith.constant 0 : index
    %c0_8 = arith.constant 0 : index
    %21 = vector.load %arg3[%c0_6, %c0_7, %c0_8] : memref<2x24x8xf32, #tpu.memory_space<vmem>>, vector<1x24x8xf32>
    %22 = vector.shape_cast %21 : vector<1x24x8xf32> to vector<24x8xf32>
    %cst = arith.constant dense<0.000000e+00> : vector<128x8xf32>
    %23 = tpu.matmul %20, %22, %cst {dimension_numbers = #tpu.dot_dimension_numbers<[1], [0], [0], [1], [0, 0, 1, 1], [], []>} : vector<128x24xf32>, vector<24x8xf32>, vector<128x8xf32> -> vector<128x8xf32>
    %c0_9 = arith.constant 0 : index
    %c0_10 = arith.constant 0 : index
    %24 = vector.load %arg4[%c0_9, %c0_10] : memref<1x8xf32, #tpu.memory_space<vmem>>, vector<1x8xf32>
    %25 = vector.broadcast %24 : vector<1x8xf32> to vector<128x8xf32>
    %26 = arith.addf %23, %25 : vector<128x8xf32>
    %27 = vector.shape_cast %26 : vector<128x8xf32> to vector<8x16x8xf32>
    %c0_11 = arith.constant 0 : index
    %c0_12 = arith.constant 0 : index
    %c0_13 = arith.constant 0 : index
    %c0_14 = arith.constant 0 : index
    %c0_15 = arith.constant 0 : index
    %28 = vector.load %arg5[%c0_11, %c0_12, %c0_13, %c0_14, %c0_15] : memref<1x8x2x16x8xf32, #tpu.memory_space<vmem>>, vector<1x8x1x16x8xf32>
    %29 = vector.shape_cast %28 : vector<1x8x1x16x8xf32> to vector<8x16x8xf32>
    %30 = vector.shape_cast %27 : vector<8x16x8xf32> to vector<1x8x1x16x8xf32>
    tpu.vector_store %arg5[%c0_11, %c0_12, %c0_13, %c0_14, %c0_15], %30 {strides = array<i32>} : memref<1x8x2x16x8xf32, #tpu.memory_space<vmem>>, vector<1x8x1x16x8xf32>,
    %31 = vector.extract_strided_slice %5 {offsets = [16, 0], sizes = [128, 4], strides = [1, 1]} : vector<160x4xf32> to vector<128x4xf32>
    %32 = vector.extract_strided_slice %9 {offsets = [16, 0], sizes = [128, 4], strides = [1, 1]} : vector<160x4xf32> to vector<128x4xf32>
    %33 = vector.extract_strided_slice %13 {offsets = [16, 0], sizes = [128, 4], strides = [1, 1]} : vector<160x4xf32> to vector<128x4xf32>
    %34 = vector.extract_strided_slice %5 {offsets = [32, 0], sizes = [128, 4], strides = [1, 1]} : vector<160x4xf32> to vector<128x4xf32>
    %35 = vector.extract_strided_slice %9 {offsets = [32, 0], sizes = [128, 4], strides = [1, 1]} : vector<160x4xf32> to vector<128x4xf32>
    %36 = vector.extract_strided_slice %13 {offsets = [32, 0], sizes = [128, 4], strides = [1, 1]} : vector<160x4xf32> to vector<128x4xf32>
    %37 = tpu.concatenate %31, %32, %33, %34, %35, %36 in 1 : vector<128x4xf32>, vector<128x4xf32>, vector<128x4xf32>, vector<128x4xf32>, vector<128x4xf32>, vector<128x4xf32> -> vector<128x24xf32>
    %c1_16 = arith.constant 1 : index
    %c0_17 = arith.constant 0 : index
    %c0_18 = arith.constant 0 : index
    %38 = vector.load %arg3[%c1_16, %c0_17, %c0_18] : memref<2x24x8xf32, #tpu.memory_space<vmem>>, vector<1x24x8xf32>
    %39 = vector.shape_cast %38 : vector<1x24x8xf32> to vector<24x8xf32>
    %cst_19 = arith.constant dense<0.000000e+00> : vector<128x8xf32>
    %40 = tpu.matmul %37, %39, %cst_19 {dimension_numbers = #tpu.dot_dimension_numbers<[1], [0], [0], [1], [0, 0, 1, 1], [], []>} : vector<128x24xf32>, vector<24x8xf32>, vector<128x8xf32> -> vector<128x8xf32>
    %c0_20 = arith.constant 0 : index
    %c0_21 = arith.constant 0 : index
    %41 = vector.load %arg4[%c0_20, %c0_21] : memref<1x8xf32, #tpu.memory_space<vmem>>, vector<1x8xf32>
    %42 = vector.broadcast %41 : vector<1x8xf32> to vector<128x8xf32>
    %43 = arith.addf %40, %42 : vector<128x8xf32>
    %44 = vector.shape_cast %43 : vector<128x8xf32> to vector<8x16x8xf32>
    %c0_22 = arith.constant 0 : index
    %c0_23 = arith.constant 0 : index
    %c1_24 = arith.constant 1 : index
    %c0_25 = arith.constant 0 : index
    %c0_26 = arith.constant 0 : index
    %45 = vector.load %arg5[%c0_22, %c0_23, %c1_24, %c0_25, %c0_26] : memref<1x8x2x16x8xf32, #tpu.memory_space<vmem>>, vector<1x8x1x16x8xf32>
    %46 = vector.shape_cast %45 : vector<1x8x1x16x8xf32> to vector<8x16x8xf32>
    %47 = vector.shape_cast %44 : vector<8x16x8xf32> to vector<1x8x1x16x8xf32>
    tpu.vector_store %arg5[%c0_22, %c0_23, %c1_24, %c0_25, %c0_26], %47 {strides = array<i32>} : memref<1x8x2x16x8xf32, #tpu.memory_space<vmem>>, vector<1x8x1x16x8xf32>,
    return
  }
  func.func @transform_0(%arg0: i32, %arg1: i32) -> (i32, i32, i32, i32) {
    %c0_i32 = arith.constant 0 : i32
    %c0_i32_0 = arith.constant 0 : i32
    %c0_i32_1 = arith.constant 0 : i32
    %c0_i32_2 = arith.constant 0 : i32
    return %arg0, %c0_i32, %c0_i32_0, %c0_i32_1 : i32, i32, i32, i32
  }
  func.func @transform_1(%arg0: i32, %arg1: i32) -> (i32, i32, i32) {
    %c0_i32 = arith.constant 0 : i32
    %c0_i32_0 = arith.constant 0 : i32
    %c0_i32_1 = arith.constant 0 : i32
    %c0_i32_2 = arith.constant 0 : i32
    return %c0_i32, %c0_i32_0, %c0_i32_1 : i32, i32, i32
  }
  func.func @transform_2(%arg0: i32, %arg1: i32) -> (i32, i32) {
    %c0_i32 = arith.constant 0 : i32
    %c0_i32_0 = arith.constant 0 : i32
    %c0_i32_1 = arith.constant 0 : i32
    return %c0_i32, %c0_i32_0 : i32, i32
  }
  func.func @transform_3(%arg0: i32, %arg1: i32) -> (i32, i32, i32, i32, i32) {
    %c0_i32 = arith.constant 0 : i32
    %c0_i32_0 = arith.constant 0 : i32
    %c0_i32_1 = arith.constant 0 : i32
    %c0_i32_2 = arith.constant 0 : i32
    return %arg0, %arg1, %c0_i32, %c0_i32_0, %c0_i32_1 : i32, i32, i32, i32, i32
  }
}

</mosaic_0001>

<bundles_post_ra>
// kernel: tpu_custom_call.1
= control target key start
LH: loop header
LB: loop body
LE: loop exit
PB: predicated region body
PF: predicated region fallthrough
CT: control target
= control target key end

     0   :  { %s1449_s12 = smov 0   ;;  %s1451_s13 = smov 0   ;;  %s1979_s0 = inlined_call_operand.vmem [shape: f32[2,18,18,4], index: 0, kind: input, shape index: {}]   ;;  %s1980_s1 = inlined_call_operand.vmem [shape: f32[2,24,8], index: 1, kind: input, shape index: {}]   ;;  %s1981_s2 = inlined_call_operand.vmem [shape: f32[1,8], index: 2, kind: input, shape index: {}]   ;;  %s1982_s3 = inlined_call_operand.vmem [shape: f32[2,16,2,16,8], index: 3, kind: output, shape index: {}]  }
   0x1   :  { %s1453_s14 = smov 0   ;;  %s1455_s15 = smov 0  }
   0x2   :  { %s1457_s16 = smov 0  }
   0x3 LB: > { %s22_s17 = sadd.s32 1, %s1414_s14  ;;  %s25_s18 = sadd.s32 1, %s1418_s15  ;;  %s1422_s16 = sphi %s1457_s16, %s13_s16   ;;  %s1418_s15 = sphi %s1455_s15, %s1986_s15   ;;  %s1414_s14 = sphi %s1453_s14, %s1985_s14   ;;  %s1410_s13 = sphi %s1451_s13, %s1984_s13   ;;  %s1406_s12 = sphi %s1449_s12, %s1983_s12  }
   0x4   : > { %p23_p0 = scmp.ge.s32.totalorder %s22_s17, 2  ;;  %p1177_p1 = scmp.ge.s32.totalorder %s1422_s16, 1 }
   0x5   : > { %p151_p2 = scmp.lt.s32.totalorder %s1422_s16, 5 }
   0x6   : > { %s1988_s17 = smov (%p23_p0, %s22_s17), 0  ;;  %s1990_s18 = smov (!%p23_p0, %s25_s18), %s1418_s15 }
   0x7   : > { %p152_p3 = pnand %p1177_p1, %p151_p2  ;;  %p27_p4 = scmp.ge.s32.totalorder %s1990_s18, 2 }
   0x8   : > { %p180_p5 = scmp.lt.s32.totalorder (!%p152_p3), %s1410_s13, 1  ;;  %s1184_s19 = smul.u32 (!%p152_p3), 192, %s1406_s12 }
   0x9   : > { %s1992_s18 = smov (%p27_p4, %s1990_s18), 0  ;;  %155 = sbr.rel (%p152_p3) target bundleno = 511 (0x1ff), region = 32 }
   0xa   : > { %s1424_s25 = smov (!%p152_p3), 4   ;;  %s1425_s26 = smov (!%p152_p3), 8  }
   0xb   : > { %s1426_s27 = smov (!%p152_p3), 12   ;;  %s1427_s5 = smov (!%p152_p3), 16  }
   0xc   : > { %s1428_s21 = smov (!%p152_p3), 20   ;;  %s1179_s22 = sshll.u32 (!%p152_p3), %s1406_s12, 3 }
   0xd   : > { %p188_p6 = scmp.lt.s32.totalorder (!%p152_p3), %s1179_s22, 15 }
   0xe   : > { %s1994_s13 = smov (!%p180_p5, %s1410_s13), 1  ;;  %v638_v13 = vld [vmem:[%s1980_s1 + $0x10] sm:$0xff]  ;;  %v637_v14 = vld [vmem:[%s1980_s1 + $0x8] sm:$0xff]  ;;  %v636_v15 = vld [vmem:[%s1980_s1] sm:$0xff]  ;;  %vm551_vm0 = vcmask 31744   ;;  %vm568_vm1 = vcmask 64512  }
   0xf   : > { %s1338_s20 = smul.u32 432, %s1994_s13  ;;  %1278 = vmatprep.subr.mxu0 %v638_v13  ;;  %v1204_v16 = vld [vmem:[%s1980_s1 + $0x28] sm:$0xff]  ;;  %v1203_v17 = vld [vmem:[%s1980_s1 + $0x20] sm:$0xff]  ;;  %v1202_v19 = vld [vmem:[%s1980_s1 + $0x18] sm:$0xff]  ;;  %vm585_vm2 = vcmask 97280   ;;  %vm602_vm3 = vcmask 130048  }
  0x10   : > { %1279 = vmatpush3.msra.mxu0 %v638_v13  ;;  %1308 = vmatprep.subr.mxu1 %v1204_v16  ;;  %vm619_vm4 = vcmask 162816   ;;  %vm646_vm5 = vcmask 195584   ;;  %s1996_s22 = smov (!%p188_p6, %s1179_s22), 15 }
  0x11   : > { %s184_s23 = scalar_lea.vmem %s1979_s0, %s1338_s20  ;;  %1280 = vmatprep.subr.mxu0 %v637_v14  ;;  %1309 = vmatpush3.msra.mxu1 %v1204_v16 }
  0x12   : > { %s1488_s24 = scalar_lea.vmem %s184_s23, %s1184_s19  ;;  %1281 = vmatpush3.msra.mxu0 %v637_v14  ;;  %1310 = vmatprep.subr.mxu1 %v1203_v17  ;;  %s1180_s23 = sshll.u32 %s1996_s22, 2 }
  0x13   : > { %v220_v0 = vld [vmem:[%s1488_s24 + $0x9] sm:$0xff]  ;;  %v219_v1 = vld [vmem:[%s1488_s24 + $0x1] sm:$0xff]  ;;  %v221_v3 = vld [vmem:[%s1488_s24 + $0x19] sm:$0xff]  ;;  %1282 = vmatprep.subr.mxu0 %v636_v15  ;;  %1311 = vmatpush3.msra.mxu1 %v1203_v17 }
  0x14   : > { %277 = vrot.lane.b32.xlu1 %v220_v0, %s1424_s25  ;;  %275 = vrot.lane.b32.xlu0 %v219_v1, %s1424_s25  ;;  %v222_v2 = vld [vmem:[%s1488_s24 + $0x21] sm:$0xff]  ;;  %v240_v7 = vld [vmem:[%s1488_s24 + $0xa] sm:$0xff] }
  0x15   : > { %v241_v4 = vld [vmem:[%s1488_s24 + $0x1a] sm:$0xff]  ;;  %v239_v5 = vld [vmem:[%s1488_s24 + $0x2] sm:$0xff]  ;;  %v1507_v8 = vld [vmem:[%s1488_s24 + $0x30] sm:$0xff]  ;;  %1283 = vmatpush3.msra.mxu0 %v636_v15  ;;  %1312 = vmatprep.subr.mxu1 %v1202_v19 }
  0x16   : > { %v242_v6 = vld [vmem:[%s1488_s24 + $0x22] sm:$0xff]  ;;  %v1510_v9 = vld [vmem:[%s1488_s24 + $0x18] sm:$0xff]  ;;  %1313 = vmatpush3.msra.mxu1 %v1202_v19  ;;  %v1561_v22 = vld [vmem:[%s1488_s24 + $0x50] sm:$0xff] }
  0x17   : > { %v1517_v10 = vld [vmem:[%s1488_s24 + $0x38] sm:$0xff]  ;;  %v1520_v11 = vld [vmem:[%s1488_s24 + $0x20] sm:$0xff]  ;;  %v1564_v23 = vld [vmem:[%s1488_s24 + $0x48] sm:$0xff] }
  0x18   : > { %281 = vrot.lane.b32.xlu1 %v222_v2, %s1424_s25  ;;  %279 = vrot.lane.b32.xlu0 %v221_v3, %s1424_s25  ;;  %v223_v12 = vld [vmem:[%s1488_s24 + $0x31] sm:$0xff]  ;;  %v224_v18 = vld [vmem:[%s1488_s24 + $0x39] sm:$0xff] }
  0x19   : > { %v243_v20 = vld [vmem:[%s1488_s24 + $0x32] sm:$0xff]  ;;  %v244_v21 = vld [vmem:[%s1488_s24 + $0x3a] sm:$0xff]  ;;  %v225_v24 = vld [vmem:[%s1488_s24 + $0x49] sm:$0xff] }
  0x1a   : > { %v245_v25 = vld [vmem:[%s1488_s24 + $0x4a] sm:$0xff]  ;;  %v246_v27 = vld [vmem:[%s1488_s24 + $0x52] sm:$0xff]  ;;  %v1586_v29 = vld [vmem:[%s1488_s24 + $0x60] sm:$0xff] }
  0x1b   : > { %v226_v26 = vld [vmem:[%s1488_s24 + $0x51] sm:$0xff]  ;;  %v1583_v28 = vld [vmem:[%s1488_s24 + $0x68] sm:$0xff]  ;;  %v1605_v34 = vld [vmem:[%s1488_s24 + $0x80] sm:$0xff] }
  0x1c   : > { %343 = vrot.lane.b32.xlu1 %v241_v4, %s1425_s26  ;;  %339 = vrot.lane.b32.xlu0 %v239_v5, %s1425_s26  ;;  %v227_v30 = vld [vmem:[%s1488_s24 + $0x61] sm:$0xff]  ;;  %v228_v32 = vld [vmem:[%s1488_s24 + $0x69] sm:$0xff] }
  0x1d   : > { %v247_v31 = vld [vmem:[%s1488_s24 + $0x62] sm:$0xff]  ;;  %v248_v33 = vld [vmem:[%s1488_s24 + $0x6a] sm:$0xff]  ;;  %v1608_v35 = vld [vmem:[%s1488_s24 + $0x78] sm:$0xff] }
  0x1e   : > { %v229_v36 = vld [vmem:[%s1488_s24 + $0x79] sm:$0xff]  ;;  %v230_v38 = vld [vmem:[%s1488_s24 + $0x81] sm:$0xff]  ;;  %v1630_v41 = vld [vmem:[%s1488_s24 + $0x90] sm:$0xff] }
  0x1f   : > { %v249_v37 = vld [vmem:[%s1488_s24 + $0x7a] sm:$0xff]  ;;  %v250_v39 = vld [vmem:[%s1488_s24 + $0x82] sm:$0xff]  ;;  %v231_v42 = vld [vmem:[%s1488_s24 + $0x91] sm:$0xff] }
  0x20   : > { %345 = vrot.lane.b32.xlu1 %v242_v6, %s1425_s26  ;;  %341 = vrot.lane.b32.xlu0 %v240_v7, %s1425_s26  ;;  %v1627_v40 = vld [vmem:[%s1488_s24 + $0x98] sm:$0xff]  ;;  %v1653_v52 = vld [vmem:[%s1488_s24 + $0xb0] sm:$0xff] }
  0x21   : > { %v251_v43 = vld [vmem:[%s1488_s24 + $0x92] sm:$0xff]  ;;  %v252_v49 = vld [vmem:[%s1488_s24 + $0x9a] sm:$0xff]  ;;  %v1656_v53 = vld [vmem:[%s1488_s24 + $0xa8] sm:$0xff] }
  0x22   : > { %v232_v44 = vld [vmem:[%s1488_s24 + $0x99] sm:$0xff]  ;;  %v233_v56 = vld [vmem:[%s1488_s24 + $0xa9] sm:$0xff]  ;;  %v234_v60 = vld [vmem:[%s1488_s24 + $0xb1] sm:$0xff] }
  0x23   : > { %v253_v59 = vld [vmem:[%s1488_s24 + $0xaa] sm:$0xff]  ;;  %v199_v1 = vld [vmem:[%s1488_s24] sm:$0xff] }
  0x24   : > { %407 = vrot.lane.b32.xlu1 %v1507_v8, %s1426_s27  ;;  %403 = vrot.lane.b32.xlu0 %v1510_v9, %s1426_s27  ;;  %v1686_v13 = vld [vmem:[%s1488_s24 + $0xc0] sm:$0xff]  ;;  %v200_v19 = vld [vmem:[%s1488_s24 + $0x8] sm:$0xff] }
  0x28   : > { %409 = vrot.lane.b32.xlu1 %v1517_v10, %s1426_s27  ;;  %405 = vrot.lane.b32.xlu0 %v1520_v11, %s1426_s27 }
  0x2c   : > { %457 = vrot.lane.b32.xlu1 %v223_v12, %s1427_s5  ;;  %453 = vrot.lane.b32.xlu0 %v221_v3, %s1427_s5 }
  0x30   : > { %455 = vrot.lane.b32.xlu1 %v222_v2, %s1427_s5  ;;  %283 = vrot.lane.b32.xlu0 %v223_v12, %s1424_s25  ;;  %v254_v2 = vld [vmem:[%s1488_s24 + $0xb2] sm:$0xff]  ;;  %v1683_v12 = vld [vmem:[%s1488_s24 + $0xc8] sm:$0xff] }
  0x34   : > { %503 = vrot.lane.b32.xlu1 %v241_v4, %s1428_s21  ;;  %459 = vrot.lane.b32.xlu0 %v224_v18, %s1427_s5 }
  0x38   : > { %285 = vrot.lane.b32.xlu1 %v224_v18, %s1424_s25  ;;  %507 = vrot.lane.b32.xlu0 %v243_v20, %s1428_s21 }
  0x3c   : > { %505 = vrot.lane.b32.xlu1 %v242_v6, %s1428_s21  ;;  %347 = vrot.lane.b32.xlu0 %v243_v20, %s1425_s26 }
  0x40   : > { %349 = vrot.lane.b32.xlu1 %v244_v21, %s1425_s26  ;;  %509 = vrot.lane.b32.xlu0 %v244_v21, %s1428_s21 }
  0x44   : > { %413 = vrot.lane.b32.xlu1 %v1561_v22, %s1426_s27  ;;  %411 = vrot.lane.b32.xlu0 %v1564_v23, %s1426_s27 }
  0x48   : > { %287 = vrot.lane.b32.xlu1 %v225_v24, %s1424_s25  ;;  %461 = vrot.lane.b32.xlu0 %v225_v24, %s1427_s5  ;;  %v236_v24 = vld [vmem:[%s1488_s24 + $0xc9] sm:$0xff] }
  0x4c   : > { %511 = vrot.lane.b32.xlu1 %v245_v25, %s1428_s21  ;;  %463 = vrot.lane.b32.xlu0 %v226_v26, %s1427_s5 }
  0x50   : > { %351 = vrot.lane.b32.xlu1 %v245_v25, %s1425_s26  ;;  %289 = vrot.lane.b32.xlu0 %v226_v26, %s1424_s25  ;;  %v235_v25 = vld [vmem:[%s1488_s24 + $0xc1] sm:$0xff] }
  0x54   : > { %353 = vrot.lane.b32.xlu1 %v246_v27, %s1425_s26  ;;  %513 = vrot.lane.b32.xlu0 %v246_v27, %s1428_s21 }
  0x58   : > { %417 = vrot.lane.b32.xlu1 %v1583_v28, %s1426_s27  ;;  %415 = vrot.lane.b32.xlu0 %v1586_v29, %s1426_s27 }
  0x5c   : > { %291 = vrot.lane.b32.xlu1 %v227_v30, %s1424_s25  ;;  %465 = vrot.lane.b32.xlu0 %v227_v30, %s1427_s5 }
  0x60   : > { %515 = vrot.lane.b32.xlu1 %v247_v31, %s1428_s21  ;;  %467 = vrot.lane.b32.xlu0 %v228_v32, %s1427_s5 }
  0x64   : > { %355 = vrot.lane.b32.xlu1 %v247_v31, %s1425_s26  ;;  %293 = vrot.lane.b32.xlu0 %v228_v32, %s1424_s25 }
  0x68   : > { %357 = vrot.lane.b32.xlu1 %v248_v33, %s1425_s26  ;;  %517 = vrot.lane.b32.xlu0 %v248_v33, %s1428_s21 }
  0x6c   : > { %421 = vrot.lane.b32.xlu1 %v1605_v34, %s1426_s27  ;;  %419 = vrot.lane.b32.xlu0 %v1608_v35, %s1426_s27 }
  0x70   : > { %295 = vrot.lane.b32.xlu1 %v229_v36, %s1424_s25  ;;  %469 = vrot.lane.b32.xlu0 %v229_v36, %s1427_s5  ;;  %v255_v36 = vld [vmem:[%s1488_s24 + $0xc2] sm:$0xff] }
  0x74   : > { %519 = vrot.lane.b32.xlu1 %v249_v37, %s1428_s21  ;;  %471 = vrot.lane.b32.xlu0 %v230_v38, %s1427_s5 }
  0x78   : > { %359 = vrot.lane.b32.xlu1 %v249_v37, %s1425_s26  ;;  %297 = vrot.lane.b32.xlu0 %v230_v38, %s1424_s25 }
  0x7c   : > { %361 = vrot.lane.b32.xlu1 %v250_v39, %s1425_s26  ;;  %521 = vrot.lane.b32.xlu0 %v250_v39, %s1428_s21 }
  0x80   : > { %425 = vrot.lane.b32.xlu1 %v1627_v40, %s1426_s27  ;;  %423 = vrot.lane.b32.xlu0 %v1630_v41, %s1426_s27 }
  0x84   : > { %299 = vrot.lane.b32.xlu1 %v231_v42, %s1424_s25  ;;  %473 = vrot.lane.b32.xlu0 %v231_v42, %s1427_s5 }
  0x86   : > { %v1641_v45 = vpop.permute.xlu1 %277  ;;  %v276_v46 = vpop.permute.xlu0 %275 }
  0x87   : > { %v552_v5 = vsel %vm551_vm0, %v199_v1, %v276_v46  ;;  %v553_v30 = vsel %vm551_vm0, %v200_v19, %v1641_v45  ;;  %v256_v46 = vld [vmem:[%s1488_s24 + $0xca] sm:$0xff] }
  0x88   : > { %523 = vrot.lane.b32.xlu1 %v251_v43, %s1428_s21  ;;  %475 = vrot.lane.b32.xlu0 %v232_v44, %s1427_s5 }
  0x8a   : > { %v1645_v47 = vpop.permute.xlu1 %281  ;;  %v280_v48 = vpop.permute.xlu0 %279 }
  0x8b   : > { %v554_v17 = vsel %vm551_vm0, %v1510_v9, %v280_v48  ;;  %v555_v42 = vsel %vm551_vm0, %v1520_v11, %v1645_v47 }
  0x8c   : > { %363 = vrot.lane.b32.xlu1 %v251_v43, %s1425_s26  ;;  %301 = vrot.lane.b32.xlu0 %v232_v44, %s1424_s25 }
  0x8e   : > { %v344_v50 = vpop.permute.xlu1 %343  ;;  %v340_v51 = vpop.permute.xlu0 %339 }
  0x8f   : > { %v569_v6 = vsel %vm568_vm1, %v552_v5, %v340_v51  ;;  %v571_v20 = vsel %vm568_vm1, %v554_v17, %v344_v50 }
  0x90   : > { %365 = vrot.lane.b32.xlu1 %v252_v49, %s1425_s26  ;;  %525 = vrot.lane.b32.xlu0 %v252_v49, %s1428_s21 }
  0x92   : > { %v1658_v54 = vpop.permute.xlu1 %345  ;;  %v342_v55 = vpop.permute.xlu0 %341 }
  0x93   : > { %v570_v32 = vsel %vm568_vm1, %v553_v30, %v342_v55  ;;  %v572_v44 = vsel %vm568_vm1, %v555_v42, %v1658_v54  ;;  %v218_v54 = vld [vmem:[%s1488_s24 + $0xe0] sm:$0xff]  ;;  %v217_v55 = vld [vmem:[%s1488_s24 + $0xd8] sm:$0xff] }
  0x94   : > { %429 = vrot.lane.b32.xlu1 %v1653_v52, %s1426_s27  ;;  %427 = vrot.lane.b32.xlu0 %v1656_v53, %s1426_s27 }
  0x96   : > { %v408_v57 = vpop.permute.xlu1 %407  ;;  %v404_v58 = vpop.permute.xlu0 %403 }
  0x97   : > { %v586_v7 = vsel %vm585_vm2, %v569_v6, %v404_v58  ;;  %v588_v21 = vsel %vm585_vm2, %v571_v20, %v408_v57 }
  0x98   : > { %303 = vrot.lane.b32.xlu1 %v233_v56, %s1424_s25  ;;  %477 = vrot.lane.b32.xlu0 %v233_v56, %s1427_s5 }
  0x9a   : > { %v410_v61 = vpop.permute.xlu1 %409  ;;  %v406_v62 = vpop.permute.xlu0 %405 }
  0x9b   : > { %v587_v33 = vsel %vm585_vm2, %v570_v32, %v406_v62  ;;  %v589_v45 = vsel %vm585_vm2, %v572_v44, %v410_v61  ;;  %v238_v61 = vld [vmem:[%s1488_s24 + $0xe1] sm:$0xff]  ;;  %v237_v62 = vld [vmem:[%s1488_s24 + $0xd9] sm:$0xff] }
  0x9c   : > { %527 = vrot.lane.b32.xlu1 %v253_v59, %s1428_s21  ;;  %479 = vrot.lane.b32.xlu0 %v234_v60, %s1427_s5 }
  0x9e   : > { %v458_v63 = vpop.permute.xlu1 %457  ;;  %v454_v0 = vpop.permute.xlu0 %453 }
  0x9f   : > { %v603_v14 = vsel %vm602_vm3, %v586_v7, %v454_v0  ;;  %v605_v9 = vsel %vm602_vm3, %v588_v21, %v458_v63 }
  0xa0   : > { %367 = vrot.lane.b32.xlu1 %v253_v59, %s1425_s26  ;;  %305 = vrot.lane.b32.xlu0 %v234_v60, %s1424_s25 }
  0xa2   : > { %v456_v3 = vpop.permute.xlu1 %455  ;;  %v1675_v4 = vpop.permute.xlu0 %283 }
  0xa3   : > { %v604_v37 = vsel %vm602_vm3, %v587_v33, %v456_v3  ;;  %v556_v58 = vsel %vm551_vm0, %v1507_v8, %v1675_v4  ;;  %v258_v8 = vld [vmem:[%s1488_s24 + $0xe2] sm:$0xff]  ;;  %v257_v3 = vld [vmem:[%s1488_s24 + $0xda] sm:$0xff]  ;;  %s1181_s24 = sshll.u32 %s1994_s13, 6 }
  0xa4   : > { %369 = vrot.lane.b32.xlu1 %v254_v2, %s1425_s26  ;;  %529 = vrot.lane.b32.xlu0 %v254_v2, %s1428_s21 }
  0xa6   : > { %v504_v15 = vpop.permute.xlu1 %503  ;;  %v460_v16 = vpop.permute.xlu0 %459 }
  0xa7   : > { %v620_v18 = vsel %vm619_vm4, %v603_v14, %v504_v15  ;;  %v606_v48 = vsel %vm602_vm3, %v589_v45, %v460_v16 }
  0xa8   : > { %433 = vrot.lane.b32.xlu1 %v1683_v12, %s1426_s27  ;;  %431 = vrot.lane.b32.xlu0 %v1686_v13, %s1426_s27 }
  0xa9   : > { %1284 = vmatprep.mubr.msk.f32.mxu0 %vm646_vm5, %v620_v18 }
  0xaa   : > { %v286_v26 = vpop.permute.xlu1 %285  ;;  %v508_v27 = vpop.permute.xlu0 %507 }
  0xab   : > { %v622_v31 = vsel %vm619_vm4, %v605_v9, %v508_v27  ;;  %v557_v6 = vsel %vm551_vm0, %v1517_v10, %v286_v26 }
  0xac   : > { %483 = vrot.lane.b32.xlu1 %v236_v24, %s1427_s5  ;;  %481 = vrot.lane.b32.xlu0 %v235_v25, %s1427_s5 }
  0xad   : > { %1314 = vmatprep.mubr.msk.f32.mxu1 %vm646_vm5, %v622_v31 }
  0xae   : > { %v506_v38 = vpop.permute.xlu1 %505  ;;  %v348_v39 = vpop.permute.xlu0 %347 }
  0xaf   : > { %v621_v43 = vsel %vm619_vm4, %v604_v37, %v506_v38  ;;  %v573_v59 = vsel %vm568_vm1, %v556_v58, %v348_v39 }
  0xb0   : > { %856 = vrot.lane.b32.xlu1 %v235_v25, %s1424_s25  ;;  %531 = vrot.lane.b32.xlu0 %v255_v36, %s1428_s21 }
  0xb1   : > { %1285 = vmatmul.mubr.msk.f32.vlgmr.msra.gmra.mxu0 %vm646_vm5, %v621_v43 }
  0xb2   : > { %1287 = vmatprep.mubr.msk.f32.mxu0 %vm646_vm5, %v622_v31  ;;  %v350_v11 = vpop.permute.xlu1 %349  ;;  %v510_v47 = vpop.permute.xlu0 %509 }
  0xb3   : > { %v623_v49 = vsel %vm619_vm4, %v606_v48, %v510_v47  ;;  %v574_v7 = vsel %vm568_vm1, %v557_v6, %v350_v11 }
  0xb4   : > { %858 = vrot.lane.b32.xlu1 %v236_v24, %s1424_s25  ;;  %533 = vrot.lane.b32.xlu0 %v256_v46, %s1428_s21  ;;  %s192_s25 = sadd.s32 %s1181_s24, %s1180_s23 }
  0xb5   : > { %1288 = vmatmul.mubr.msk.f32.gmra.mxu0 %vm646_vm5, %v623_v49  ;;  %1315 = vmatmul.mubr.msk.f32.vlgmr.msra.gmra.mxu1 %vm646_vm5, %v623_v49 }
  0xb6   : > { %v414_v50 = vpop.permute.xlu1 %413  ;;  %v412_v51 = vpop.permute.xlu0 %411 }
  0xb7   : > { %v590_v60 = vsel %vm585_vm2, %v573_v59, %v412_v51  ;;  %v591_v14 = vsel %vm585_vm2, %v574_v7, %v414_v50 }
  0xb8   : > { %864 = vrot.lane.b32.xlu1 %v256_v46, %s1425_s26  ;;  %862 = vrot.lane.b32.xlu0 %v255_v36, %s1425_s26  ;;  %s1182_s26 = sshll.u32 %s192_s25, 3 }
  0xb9   : > { %s1866_s4 = scalar_lea.vmem %s1982_s3, %s1182_s26 }
  0xba   : > { %v288_v56 = vpop.permute.xlu1 %287  ;;  %v462_v57 = vpop.permute.xlu0 %461 }
  0xbb   : > { %v607_v63 = vsel %vm602_vm3, %v590_v60, %v462_v57  ;;  %v558_v24 = vsel %vm551_vm0, %v1564_v23, %v288_v56 }
  0xbc   : > { %872 = vrot.lane.b32.xlu1 %v218_v54, %s1426_s27  ;;  %870 = vrot.lane.b32.xlu0 %v217_v55, %s1426_s27 }
  0xbe   : > { %v512_v0 = vpop.permute.xlu1 %511  ;;  %v464_v1 = vpop.permute.xlu0 %463 }
  0xbf   : > { %v624_v2 = vsel %vm619_vm4, %v607_v63, %v512_v0  ;;  %v608_v15 = vsel %vm602_vm3, %v591_v14, %v464_v1 }
  0xc0   : > { %880 = vrot.lane.b32.xlu1 %v238_v61, %s1427_s5  ;;  %878 = vrot.lane.b32.xlu0 %v237_v62, %s1427_s5 }
  0xc1   : > { %1290 = vmatprep.mubr.msk.f32.mxu0 %vm646_vm5, %v624_v2  ;;  %1317 = vmatprep.mubr.msk.f32.mxu1 %vm646_vm5, %v624_v2 }
  0xc2   : > { %v352_v4 = vpop.permute.xlu1 %351  ;;  %v290_v5 = vpop.permute.xlu0 %289 }
  0xc3   : > { %v575_v25 = vsel %vm568_vm1, %v558_v24, %v352_v4  ;;  %v559_v36 = vsel %vm551_vm0, %v1561_v22, %v290_v5 }
  0xc4   : > { %888 = vrot.lane.b32.xlu1 %v258_v8, %s1428_s21  ;;  %886 = vrot.lane.b32.xlu0 %v257_v3, %s1428_s21 }
  0xc6   : > { %v354_v16 = vpop.permute.xlu1 %353  ;;  %v514_v17 = vpop.permute.xlu0 %513 }
  0xc7   : > { %v625_v18 = vsel %vm619_vm4, %v608_v15, %v514_v17  ;;  %v576_v23 = vsel %vm568_vm1, %v559_v36, %v354_v16 }
  0xc8   : > { %1291 = vmatmul.mubr.msk.f32.gmra.mxu0 %vm646_vm5, %v625_v18  ;;  %1318 = vmatmul.mubr.msk.f32.gmra.mxu1 %vm646_vm5, %v625_v18 }
  0xca   : > { %v418_v19 = vpop.permute.xlu1 %417  ;;  %v416_v10 = vpop.permute.xlu0 %415 }
  0xcb   : > { %v592_v9 = vsel %vm585_vm2, %v575_v25, %v416_v10  ;;  %v593_v37 = vsel %vm585_vm2, %v576_v23, %v418_v19 }
  0xce   : > { %v292_v20 = vpop.permute.xlu1 %291  ;;  %v466_v21 = vpop.permute.xlu0 %465 }
  0xcf   : > { %v609_v26 = vsel %vm602_vm3, %v592_v9, %v466_v21  ;;  %v560_v22 = vsel %vm551_vm0, %v1586_v29, %v292_v20 }
  0xd2   : > { %v516_v27 = vpop.permute.xlu1 %515  ;;  %v468_v30 = vpop.permute.xlu0 %467 }
  0xd3   : > { %v626_v31 = vsel %vm619_vm4, %v609_v26, %v516_v27  ;;  %v610_v38 = vsel %vm602_vm3, %v593_v37, %v468_v30 }
  0xd4   : > { %1293 = vmatprep.mubr.msk.f32.mxu0 %vm646_vm5, %v626_v31  ;;  %1320 = vmatprep.mubr.msk.f32.mxu1 %vm646_vm5, %v626_v31 }
  0xd6   : > { %v356_v32 = vpop.permute.xlu1 %355  ;;  %v294_v33 = vpop.permute.xlu0 %293 }
  0xd7   : > { %v577_v11 = vsel %vm568_vm1, %v560_v22, %v356_v32  ;;  %v561_v57 = vsel %vm551_vm0, %v1583_v28, %v294_v33 }
  0xda   : > { %v358_v39 = vpop.permute.xlu1 %357  ;;  %v518_v42 = vpop.permute.xlu0 %517 }
  0xdb   : > { %v627_v43 = vsel %vm619_vm4, %v610_v38, %v518_v42  ;;  %v578_v29 = vsel %vm568_vm1, %v561_v57, %v358_v39 }
  0xdc   : > { %1294 = vmatmul.mubr.msk.f32.gmra.mxu0 %vm646_vm5, %v627_v43  ;;  %1321 = vmatmul.mubr.msk.f32.gmra.mxu1 %vm646_vm5, %v627_v43 }
  0xde   : > { %v422_v44 = vpop.permute.xlu1 %421  ;;  %v420_v45 = vpop.permute.xlu0 %419 }
  0xdf   : > { %v594_v47 = vsel %vm585_vm2, %v577_v11, %v420_v45  ;;  %v595_v58 = vsel %vm585_vm2, %v578_v29, %v422_v44 }
  0xe2   : > { %v296_v46 = vpop.permute.xlu1 %295  ;;  %v470_v48 = vpop.permute.xlu0 %469 }
  0xe3   : > { %v611_v49 = vsel %vm602_vm3, %v594_v47, %v470_v48  ;;  %v562_v28 = vsel %vm551_vm0, %v1608_v35, %v296_v46 }
  0xe6   : > { %v520_v50 = vpop.permute.xlu1 %519  ;;  %v472_v51 = vpop.permute.xlu0 %471 }
  0xe7   : > { %v628_v54 = vsel %vm619_vm4, %v611_v49, %v520_v50  ;;  %v612_v59 = vsel %vm602_vm3, %v595_v58, %v472_v51 }
  0xe8   : > { %1296 = vmatprep.mubr.msk.f32.mxu0 %vm646_vm5, %v628_v54  ;;  %1323 = vmatprep.mubr.msk.f32.mxu1 %vm646_vm5, %v628_v54 }
  0xea   : > { %v360_v55 = vpop.permute.xlu1 %359  ;;  %v298_v56 = vpop.permute.xlu0 %297 }
  0xeb   : > { %v579_v8 = vsel %vm568_vm1, %v562_v28, %v360_v55  ;;  %v563_v16 = vsel %vm551_vm0, %v1605_v34, %v298_v56 }
  0xee   : > { %v362_v60 = vpop.permute.xlu1 %361  ;;  %v522_v61 = vpop.permute.xlu0 %521 }
  0xef   : > { %v629_v62 = vsel %vm619_vm4, %v612_v59, %v522_v61  ;;  %v580_v35 = vsel %vm568_vm1, %v563_v16, %v362_v60 }
  0xf0   : > { %1297 = vmatmul.mubr.msk.f32.gmra.mxu0 %vm646_vm5, %v629_v62  ;;  %1324 = vmatmul.mubr.msk.f32.gmra.mxu1 %vm646_vm5, %v629_v62 }
  0xf2   : > { %v426_v63 = vpop.permute.xlu1 %425  ;;  %v424_v0 = vpop.permute.xlu0 %423 }
  0xf3   : > { %v596_v3 = vsel %vm585_vm2, %v579_v8, %v424_v0  ;;  %v597_v17 = vsel %vm585_vm2, %v580_v35, %v426_v63 }
  0xf6   : > { %v300_v1 = vpop.permute.xlu1 %299  ;;  %v474_v2 = vpop.permute.xlu0 %473 }
  0xf7   : > { %v613_v4 = vsel %vm602_vm3, %v596_v3, %v474_v2  ;;  %v564_v34 = vsel %vm551_vm0, %v1630_v41, %v300_v1 }
  0xfa   : > { %v524_v5 = vpop.permute.xlu1 %523  ;;  %v476_v6 = vpop.permute.xlu0 %475 }
  0xfb   : > { %v630_v7 = vsel %vm619_vm4, %v613_v4, %v524_v5  ;;  %v614_v18 = vsel %vm602_vm3, %v597_v17, %v476_v6 }
  0xfc   : > { %1299 = vmatprep.mubr.msk.f32.mxu0 %vm646_vm5, %v630_v7  ;;  %1326 = vmatprep.mubr.msk.f32.mxu1 %vm646_vm5, %v630_v7 }
  0xfe   : > { %v364_v14 = vpop.permute.xlu1 %363  ;;  %v302_v15 = vpop.permute.xlu0 %301 }
  0xff   : > { %v581_v26 = vsel %vm568_vm1, %v564_v34, %v364_v14  ;;  %v565_v37 = vsel %vm551_vm0, %v1627_v40, %v302_v15 }
 0x102   : > { %v366_v19 = vpop.permute.xlu1 %365  ;;  %v526_v10 = vpop.permute.xlu0 %525 }
 0x103   : > { %v631_v20 = vsel %vm619_vm4, %v614_v18, %v526_v10  ;;  %v582_v41 = vsel %vm568_vm1, %v565_v37, %v366_v19 }
 0x104   : > { %1300 = vmatmul.mubr.msk.f32.gmra.mxu0 %vm646_vm5, %v631_v20  ;;  %1327 = vmatmul.mubr.msk.f32.gmra.mxu1 %vm646_vm5, %v631_v20 }
 0x106   : > { %v430_v21 = vpop.permute.xlu1 %429  ;;  %v428_v24 = vpop.permute.xlu0 %427 }
 0x107   : > { %v598_v27 = vsel %vm585_vm2, %v581_v26, %v428_v24  ;;  %v599_v38 = vsel %vm585_vm2, %v582_v41, %v430_v21 }
 0x10a   : > { %v304_v25 = vpop.permute.xlu1 %303  ;;  %v478_v9 = vpop.permute.xlu0 %477 }
 0x10b   : > { %v615_v30 = vsel %vm602_vm3, %v598_v27, %v478_v9  ;;  %v566_v40 = vsel %vm551_vm0, %v1656_v53, %v304_v25 }
 0x10e   : > { %v528_v31 = vpop.permute.xlu1 %527  ;;  %v480_v32 = vpop.permute.xlu0 %479 }
 0x10f   : > { %v632_v33 = vsel %vm619_vm4, %v615_v30, %v528_v31  ;;  %v616_v39 = vsel %vm602_vm3, %v599_v38, %v480_v32 }
 0x110   : > { %1302 = vmatprep.mubr.msk.f32.mxu0 %vm646_vm5, %v632_v33  ;;  %1329 = vmatprep.mubr.msk.f32.mxu1 %vm646_vm5, %v632_v33 }
 0x112   : > { %v368_v36 = vpop.permute.xlu1 %367  ;;  %v306_v23 = vpop.permute.xlu0 %305 }
 0x113   : > { %v583_v11 = vsel %vm568_vm1, %v566_v40, %v368_v36  ;;  %v567_v54 = vsel %vm551_vm0, %v1653_v52, %v306_v23 }
 0x116   : > { %v370_v42 = vpop.permute.xlu1 %369  ;;  %v530_v43 = vpop.permute.xlu0 %529 }
 0x117   : > { %v633_v44 = vsel %vm619_vm4, %v616_v39, %v530_v43  ;;  %v584_v56 = vsel %vm568_vm1, %v567_v54, %v370_v42 }
 0x118   : > { %1303 = vmatmul.mubr.msk.f32.gmra.mxu0 %vm646_vm5, %v633_v44  ;;  %1330 = vmatmul.mubr.msk.f32.gmra.mxu1 %vm646_vm5, %v633_v44 }
 0x11a   : > { %v434_v45 = vpop.permute.xlu1 %433  ;;  %v432_v46 = vpop.permute.xlu0 %431 }
 0x11b   : > { %v600_v47 = vsel %vm585_vm2, %v583_v11, %v432_v46  ;;  %v601_v53 = vsel %vm585_vm2, %v584_v56, %v434_v45 }
 0x11e   : > { %v484_v48 = vpop.permute.xlu1 %483  ;;  %v482_v22 = vpop.permute.xlu0 %481 }
 0x11f   : > { %v617_v49 = vsel %vm602_vm3, %v600_v47, %v482_v22  ;;  %v618_v57 = vsel %vm602_vm3, %v601_v53, %v484_v48 }
 0x122   : > { %v857_v50 = vpop.permute.xlu1 %856  ;;  %v532_v51 = vpop.permute.xlu0 %531 }
 0x123   : > { %v634_v55 = vsel %vm619_vm4, %v617_v49, %v532_v51  ;;  %v892_v1 = vsel %vm551_vm0, %v1686_v13, %v857_v50 }
 0x124   : > { %1305 = vmatprep.mubr.msk.f32.mxu0 %vm646_vm5, %v634_v55  ;;  %1332 = vmatprep.mubr.msk.f32.mxu1 %vm646_vm5, %v634_v55 }
 0x126   : > { %v859_v29 = vpop.permute.xlu1 %858  ;;  %v534_v58 = vpop.permute.xlu0 %533 }
 0x127   : > { %v635_v59 = vsel %vm619_vm4, %v618_v57, %v534_v58  ;;  %v893_v2 = vsel %vm551_vm0, %v1683_v12, %v859_v29  ;;  %v1861_v12 = vld [vmem:[%s1981_s2] ss:$0 sm:$0xff] }
 0x128   : > { %1306 = vmatmul.mubr.msk.f32.gmra.mxu0 %vm646_vm5, %v635_v59  ;;  %1333 = vmatmul.mubr.msk.f32.gmra.mxu1 %vm646_vm5, %v635_v59 }
 0x12a   : > { %v865_v52 = vpop.permute.xlu1 %864  ;;  %v863_v60 = vpop.permute.xlu0 %862 }
 0x12b   : > { %v895_v28 = vsel %vm568_vm1, %v893_v2, %v865_v52  ;;  %v894_v8 = vsel %vm568_vm1, %v892_v1, %v863_v60 }
 0x12e   : > { %v873_v61 = vpop.permute.xlu1 %872  ;;  %v871_v62 = vpop.permute.xlu0 %870 }
 0x12f   : > { %v897_v3 = vsel %vm585_vm2, %v895_v28, %v873_v61  ;;  %v896_v4 = vsel %vm585_vm2, %v894_v8, %v871_v62 }
 0x132   : > { %v881_v63 = vpop.permute.xlu1 %880  ;;  %v879_v0 = vpop.permute.xlu0 %878 }
 0x133   : > { %v899_v5 = vsel %vm602_vm3, %v897_v3, %v881_v63  ;;  %v898_v6 = vsel %vm602_vm3, %v896_v4, %v879_v0 }
 0x136   : > { %v889_v7 = vpop.permute.xlu1 %888  ;;  %v887_v14 = vpop.permute.xlu0 %886 }
 0x137   : > { %v901_v13 = vsel %vm619_vm4, %v899_v5, %v889_v7  ;;  %v900_v15 = vsel %vm619_vm4, %v898_v6, %v887_v14 }
 0x138   : > { %1335 = vmatprep.mubr.msk.f32.mxu1 %vm646_vm5, %v900_v15 }
 0x139   : > { %1336 = vmatmul.mubr.msk.f32.gmra.mxu1 %vm646_vm5, %v901_v13 }
 0x171   : > { %v1286_v16 = vpop.f32.mrf.mxu0 }
 0x172   : > { %v767_v35 = vadd.f32 %v1286_v16, %v1861_v12 }
 0x173   : > { %v761_v17 = vpop.f32.mrf.mxu0 }
 0x174   : > { %841 = vst.msk [vmem:[%s1866_s4 + $0x8] sm:$0xff] %vm568_vm1, %v767_v35  ;;  %v762_v18 = vadd.f32 %v1861_v12, %v761_v17 }
 0x175   : > { %v1289_v19 = vpop.f32.mrf.mxu0  ;;  %v1316_v10 = vpop.f32.mrf.mxu1 }
 0x176   : > { %840 = vst.msk [vmem:[%s1866_s4] sm:$0xff] %vm568_vm1, %v762_v18  ;;  %v777_v20 = vadd.f32 %v1289_v19, %v1861_v12  ;;  %v991_v21 = vadd.f32 %v1316_v10, %v1861_v12 }
 0x177   : > { %v771_v24 = vpop.f32.mrf.mxu0  ;;  %v985_v25 = vpop.f32.mrf.mxu1 }
 0x178   : > { %843 = vst.msk [vmem:[%s1866_s4 + $0x28] sm:$0xff] %vm568_vm1, %v777_v20  ;;  %1223 = vst.msk [vmem:[%s1866_s4 + $0x18] sm:$0xff] %vm568_vm1, %v991_v21  ;;  %v772_v9 = vadd.f32 %v1861_v12, %v771_v24  ;;  %v986_v34 = vadd.f32 %v1861_v12, %v985_v25 }
 0x17a   : > { %842 = vst.msk [vmem:[%s1866_s4 + $0x20] sm:$0xff] %vm568_vm1, %v772_v9  ;;  %1222 = vst.msk [vmem:[%s1866_s4 + $0x10] sm:$0xff] %vm568_vm1, %v986_v34 }
 0x188   : > { %v1292_v26 = vpop.f32.mrf.mxu0  ;;  %v1319_v27 = vpop.f32.mrf.mxu1 }
 0x189   : > { %v787_v30 = vadd.f32 %v1292_v26, %v1861_v12  ;;  %v1001_v31 = vadd.f32 %v1319_v27, %v1861_v12 }
 0x18a   : > { %v781_v32 = vpop.f32.mrf.mxu0  ;;  %v995_v33 = vpop.f32.mrf.mxu1 }
 0x18b   : > { %845 = vst.msk [vmem:[%s1866_s4 + $0x48] sm:$0xff] %vm568_vm1, %v787_v30  ;;  %1225 = vst.msk [vmem:[%s1866_s4 + $0x38] sm:$0xff] %vm568_vm1, %v1001_v31  ;;  %v782_v36 = vadd.f32 %v1861_v12, %v781_v32  ;;  %v996_v23 = vadd.f32 %v1861_v12, %v995_v33 }
 0x18d   : > { %844 = vst.msk [vmem:[%s1866_s4 + $0x40] sm:$0xff] %vm568_vm1, %v782_v36  ;;  %1224 = vst.msk [vmem:[%s1866_s4 + $0x30] sm:$0xff] %vm568_vm1, %v996_v23 }
 0x19c   : > { %v1295_v37 = vpop.f32.mrf.mxu0  ;;  %v1322_v41 = vpop.f32.mrf.mxu1 }
 0x19d   : > { %v797_v38 = vadd.f32 %v1295_v37, %v1861_v12  ;;  %v1011_v39 = vadd.f32 %v1322_v41, %v1861_v12 }
 0x19e   : > { %v791_v42 = vpop.f32.mrf.mxu0  ;;  %v1005_v43 = vpop.f32.mrf.mxu1 }
 0x19f   : > { %847 = vst.msk [vmem:[%s1866_s4 + $0x68] sm:$0xff] %vm568_vm1, %v797_v38  ;;  %1227 = vst.msk [vmem:[%s1866_s4 + $0x58] sm:$0xff] %vm568_vm1, %v1011_v39  ;;  %v792_v44 = vadd.f32 %v1861_v12, %v791_v42  ;;  %v1006_v45 = vadd.f32 %v1861_v12, %v1005_v43 }
 0x1a1   : > { %846 = vst.msk [vmem:[%s1866_s4 + $0x60] sm:$0xff] %vm568_vm1, %v792_v44  ;;  %1226 = vst.msk [vmem:[%s1866_s4 + $0x50] sm:$0xff] %vm568_vm1, %v1006_v45 }
 0x1b0   : > { %v1298_v46 = vpop.f32.mrf.mxu0  ;;  %v1325_v48 = vpop.f32.mrf.mxu1 }
 0x1b1   : > { %v807_v22 = vadd.f32 %v1298_v46, %v1861_v12  ;;  %v1021_v40 = vadd.f32 %v1325_v48, %v1861_v12 }
 0x1b2   : > { %v801_v11 = vpop.f32.mrf.mxu0  ;;  %v1015_v47 = vpop.f32.mrf.mxu1 }
 0x1b3   : > { %849 = vst.msk [vmem:[%s1866_s4 + $0x88] sm:$0xff] %vm568_vm1, %v807_v22  ;;  %1229 = vst.msk [vmem:[%s1866_s4 + $0x78] sm:$0xff] %vm568_vm1, %v1021_v40  ;;  %v802_v49 = vadd.f32 %v1861_v12, %v801_v11  ;;  %v1016_v50 = vadd.f32 %v1861_v12, %v1015_v47 }
 0x1b5   : > { %848 = vst.msk [vmem:[%s1866_s4 + $0x80] sm:$0xff] %vm568_vm1, %v802_v49  ;;  %1228 = vst.msk [vmem:[%s1866_s4 + $0x70] sm:$0xff] %vm568_vm1, %v1016_v50 }
 0x1c4   : > { %v1301_v51 = vpop.f32.mrf.mxu0  ;;  %v1328_v54 = vpop.f32.mrf.mxu1 }
 0x1c5   : > { %v817_v55 = vadd.f32 %v1301_v51, %v1861_v12  ;;  %v1031_v56 = vadd.f32 %v1328_v54, %v1861_v12 }
 0x1c6   : > { %v811_v53 = vpop.f32.mrf.mxu0  ;;  %v1025_v57 = vpop.f32.mrf.mxu1 }
 0x1c7   : > { %851 = vst.msk [vmem:[%s1866_s4 + $0xa8] sm:$0xff] %vm568_vm1, %v817_v55  ;;  %1231 = vst.msk [vmem:[%s1866_s4 + $0x98] sm:$0xff] %vm568_vm1, %v1031_v56  ;;  %v812_v29 = vadd.f32 %v1861_v12, %v811_v53  ;;  %v1026_v58 = vadd.f32 %v1861_v12, %v1025_v57 }
 0x1c9   : > { %850 = vst.msk [vmem:[%s1866_s4 + $0xa0] sm:$0xff] %vm568_vm1, %v812_v29  ;;  %1230 = vst.msk [vmem:[%s1866_s4 + $0x90] sm:$0xff] %vm568_vm1, %v1026_v58 }
 0x1d8   : > { %v1304_v59 = vpop.f32.mrf.mxu0  ;;  %v1331_v52 = vpop.f32.mrf.mxu1 }
 0x1d9   : > { %v827_v60 = vadd.f32 %v1304_v59, %v1861_v12  ;;  %v1041_v61 = vadd.f32 %v1331_v52, %v1861_v12 }
 0x1da   : > { %v821_v62 = vpop.f32.mrf.mxu0  ;;  %v1035_v63 = vpop.f32.mrf.mxu1 }
 0x1db   : > { %853 = vst.msk [vmem:[%s1866_s4 + $0xc8] sm:$0xff] %vm568_vm1, %v827_v60  ;;  %1233 = vst.msk [vmem:[%s1866_s4 + $0xb8] sm:$0xff] %vm568_vm1, %v1041_v61  ;;  %v822_v0 = vadd.f32 %v1861_v12, %v821_v62  ;;  %v1036_v1 = vadd.f32 %v1861_v12, %v1035_v63 }
 0x1dd   : > { %852 = vst.msk [vmem:[%s1866_s4 + $0xc0] sm:$0xff] %vm568_vm1, %v822_v0  ;;  %1232 = vst.msk [vmem:[%s1866_s4 + $0xb0] sm:$0xff] %vm568_vm1, %v1036_v1 }
 0x1e8   : > { %v1307_v2 = vpop.f32.mrf.mxu0  ;;  %v1334_v28 = vpop.f32.mrf.mxu1 }
 0x1e9   : > { %v837_v8 = vadd.f32 %v1307_v2, %v1861_v12  ;;  %v1051_v3 = vadd.f32 %v1334_v28, %v1861_v12 }
 0x1ea   : > { %v831_v4 = vpop.f32.mrf.mxu0  ;;  %v1045_v5 = vpop.f32.mrf.mxu1 }
 0x1eb   : > { %855 = vst.msk [vmem:[%s1866_s4 + $0xe8] sm:$0xff] %vm568_vm1, %v837_v8  ;;  %1235 = vst.msk [vmem:[%s1866_s4 + $0xd8] sm:$0xff] %vm568_vm1, %v1051_v3  ;;  %v832_v6 = vadd.f32 %v1861_v12, %v831_v4  ;;  %v1046_v7 = vadd.f32 %v1861_v12, %v1045_v5 }
 0x1ed   : > { %854 = vst.msk [vmem:[%s1866_s4 + $0xe0] sm:$0xff] %vm568_vm1, %v832_v6  ;;  %1234 = vst.msk [vmem:[%s1866_s4 + $0xd0] sm:$0xff] %vm568_vm1, %v1046_v7 }
 0x1f9   : > { %v1337_v14 = vpop.f32.mrf.mxu1 }
 0x1fa   : > { %v1061_v13 = vadd.f32 %v1337_v14, %v1861_v12 }
 0x1fb   : > { %v1055_v15 = vpop.f32.mrf.mxu1 }
 0x1fc   : > { %1237 = vst.msk [vmem:[%s1866_s4 + $0xf8] sm:$0xff] %vm568_vm1, %v1061_v13  ;;  %v1056_v16 = vadd.f32 %v1861_v12, %v1055_v15 }
 0x1fe   : > { %1236 = vst.msk [vmem:[%s1866_s4 + $0xf0] sm:$0xff] %vm568_vm1, %v1056_v16 }
 0x1ff PF: > { %s13_s16 = sadd.s32 1, %s1422_s16   ;;  %s1983_s12 = smov %s1414_s14 }
 0x200   : > { %p10_p7 = scmp.ge.s32.totalorder %s13_s16, 6   ;;  %s1984_s13 = smov %s1418_s15 }
 0x201   : > { %s1985_s14 = smov %s1988_s17  ;;  %s1986_s15 = smov %s1992_s18 }
 0x202   :  { %12 = sbr.rel (!%p10_p7) target bundleno = 3 (0x3), region = 65 }

</bundles_post_ra>
